<compile_context>
chip_gen: v7x
topology: tpu7x:2x2x1
jax: 0.10.0
libtpu: 0.0.40
codegen_flags: <defaults>
</compile_context>

<pallas_src>
import functools
import math

import jax
import jax.numpy as jnp
from jax.experimental import pallas as pl
from jax.experimental.pallas import tpu as pltpu

BN_EPS = 1e-5
LANE = 128
SUBLANE = 8
MONOLITHIC_MAX_ROWS = 1024        # above this the batch-tiled pipeline is used

# Row layout of the packed per-layer vector slab (8, W) f32.
_R_B1, _R_G1, _R_BE1, _R_B2, _R_G2, _R_BE2, _R_B3 = range(7)


def _round_up(n, m=LANE):
    return ((n + m - 1) // m) * m


def _vmem_limit_bytes():
    """Generation-aware VMEM limit: ~85% of per-core VMEM, clamped."""
    try:
        cap = getattr(pltpu.get_tpu_info(), "vmem_capacity_bytes", None)
    except Exception:
        cap = None
    if not cap:
        return 48 * 1024 * 1024
    return max(32 * 1024 * 1024, min(int(0.85 * cap), 112 * 1024 * 1024))


def _bn_affine(s, ss, g, be, inv_b):
    """Fold training-mode BatchNorm into one (scale, shift) pair (all f32)."""
    mu = s * inv_b
    var = jnp.maximum(ss * inv_b - mu * mu, 0.0)      # biased (training) variance
    scale = g * jax.lax.rsqrt(var + BN_EPS)
    shift = be - mu * scale
    return scale, shift


# ---------------------------------------------------------------------------
# Monolithic fused kernel (small batch): whole batch VMEM-resident, one call.
# ---------------------------------------------------------------------------
def _dni_monolithic_kernel(x_ref, w1_ref, w2_ref, w3_ref, vec_ref, out_ref):
    inv_b = 1.0 / x_ref.shape[0]                      # static batch size
    hidden = w1_ref.shape[1]
    d_pad = w3_ref.shape[1]

    def linear_relu_bn(h_in_bf16, w_ref, b, g, be):
        # bf16 MXU matmul with f32 accumulation; BN/ReLU math in f32.
        h = jnp.dot(h_in_bf16, w_ref[...],
                    preferred_element_type=jnp.float32) + b
        h = jnp.maximum(h, 0.0)
        s = jnp.sum(h, axis=0, keepdims=True)
        ss = jnp.sum(h * h, axis=0, keepdims=True)
        scale, shift = _bn_affine(s, ss, g, be, inv_b)
        # Emit bf16 directly: it is exactly what the next MXU matmul consumes.
        return (h * scale + shift).astype(jnp.bfloat16)

    h = linear_relu_bn(x_ref[...], w1_ref,
                       vec_ref[_R_B1:_R_B1 + 1, :hidden],
                       vec_ref[_R_G1:_R_G1 + 1, :hidden],
                       vec_ref[_R_BE1:_R_BE1 + 1, :hidden])
    h = linear_relu_bn(h, w2_ref,
                       vec_ref[_R_B2:_R_B2 + 1, :hidden],
                       vec_ref[_R_G2:_R_G2 + 1, :hidden],
                       vec_ref[_R_BE2:_R_BE2 + 1, :hidden])
    out = jnp.dot(h, w3_ref[...], preferred_element_type=jnp.float32)
    out_ref[...] = (out + vec_ref[_R_B3:_R_B3 + 1, :d_pad]).astype(out_ref.dtype)


# ---------------------------------------------------------------------------
# Batch-tiled 3-phase pipeline (large batch).  BatchNorm needs full-batch
# statistics, so each phase emits per-tile sum/sumsq partials; the affine is
# applied in the *next* phase once the reduction over tiles is final.
# ---------------------------------------------------------------------------
def _phase1_kernel(x_ref, w1_ref, vec_ref, h1_ref, pstats_ref):
    hidden = w1_ref.shape[1]
    b1 = vec_ref[_R_B1:_R_B1 + 1, :hidden]
    h = jnp.dot(x_ref[...], w1_ref[...], preferred_element_type=jnp.float32) + b1
    h = jnp.maximum(h, 0.0).astype(jnp.bfloat16)      # bf16 HBM round-trip
    h1_ref[...] = h
    hf = h.astype(jnp.float32)                        # stats of the stored values
    pstats_ref[0] = jnp.concatenate(
        [jnp.sum(hf, axis=0, keepdims=True),
         jnp.sum(hf * hf, axis=0, keepdims=True)], axis=0)


def _phase2_kernel(h1_ref, stats1_ref, w2_ref, vec_ref, h2_ref, pstats_ref, *,
                   inv_b):
    hidden = w2_ref.shape[1]
    st = stats1_ref[...]
    scale, shift = _bn_affine(st[0:1], st[1:2],
                              vec_ref[_R_G1:_R_G1 + 1, :hidden],
                              vec_ref[_R_BE1:_R_BE1 + 1, :hidden], inv_b)
    h1bn = (h1_ref[...].astype(jnp.float32) * scale + shift).astype(jnp.bfloat16)
    h = (jnp.dot(h1bn, w2_ref[...], preferred_element_type=jnp.float32)
         + vec_ref[_R_B2:_R_B2 + 1, :hidden])
    h = jnp.maximum(h, 0.0).astype(jnp.bfloat16)
    h2_ref[...] = h
    hf = h.astype(jnp.float32)
    pstats_ref[0] = jnp.concatenate(
        [jnp.sum(hf, axis=0, keepdims=True),
         jnp.sum(hf * hf, axis=0, keepdims=True)], axis=0)


def _phase3_kernel(h2_ref, stats2_ref, w3_ref, vec_ref, out_ref, *, inv_b):
    hidden = w3_ref.shape[0]
    d_pad = w3_ref.shape[1]
    st = stats2_ref[...]
    scale, shift = _bn_affine(st[0:1], st[1:2],
                              vec_ref[_R_G2:_R_G2 + 1, :hidden],
                              vec_ref[_R_BE2:_R_BE2 + 1, :hidden], inv_b)
    h2bn = (h2_ref[...].astype(jnp.float32) * scale + shift).astype(jnp.bfloat16)
    out = jnp.dot(h2bn, w3_ref[...], preferred_element_type=jnp.float32)
    out_ref[...] = (out + vec_ref[_R_B3:_R_B3 + 1, :d_pad]).astype(out_ref.dtype)


def _whole(shape):
    """Whole-array (resident) BlockSpec: same block for every grid step."""
    return pl.BlockSpec(shape, lambda *idx: (0,) * len(shape))


def _monolithic_call(x, params, vmem_limit):
    B, d_pad = x.shape
    vmem = pl.BlockSpec(memory_space=pltpu.MemorySpace.VMEM)
    args = (x, params["w1"], params["w2"], params["w3"], params["vecs"])
    return pl.pallas_call(
        _dni_monolithic_kernel,
        out_shape=jax.ShapeDtypeStruct((B, d_pad), jnp.float32),
        in_specs=[vmem] * len(args),
        out_specs=vmem,
        compiler_params=pltpu.CompilerParams(vmem_limit_bytes=vmem_limit),
    )(*args)


def _tiled_call(x, params, tb, vmem_limit):
    B, d_pad = x.shape
    hidden = params["w1"].shape[1]
    W = params["vecs"].shape[1]
    nb = B // tb
    inv_b = 1.0 / B
    cparams = pltpu.CompilerParams(dimension_semantics=("parallel",),
                                   vmem_limit_bytes=vmem_limit)
    # TODO(synk): v7x could additionally tile the hidden dimension (per-feature
    # BN stats stay core-local) for a second parallel axis.

    def row_spec(width):
        return pl.BlockSpec((tb, width), lambda i: (i, 0))

    stats_out_spec = pl.BlockSpec((1, 2, hidden), lambda i: (i, 0, 0))
    stats_shape = jax.ShapeDtypeStruct((nb, 2, hidden), jnp.float32)
    hid_shape = jax.ShapeDtypeStruct((B, hidden), jnp.bfloat16)

    # Phase 1: x -> pre-BN h1 (bf16) + per-tile BN1 partial sums.
    h1, p1 = pl.pallas_call(
        _phase1_kernel,
        out_shape=(hid_shape, stats_shape),
        grid_spec=pltpu.PrefetchScalarGridSpec(
            num_scalar_prefetch=0, grid=(nb,),
            in_specs=[row_spec(d_pad), _whole((d_pad, hidden)),
                      _whole((SUBLANE, W))],
            out_specs=[row_spec(hidden), stats_out_spec]),
        compiler_params=cparams,
    )(x, params["w1"], params["vecs"])
    stats1 = jnp.sum(p1, axis=0)            # (2, hidden) full-batch sum / sumsq

    # Phase 2: BN1 affine -> linear2 -> ReLU -> h2 (bf16) + BN2 partial sums.
    h2, p2 = pl.pallas_call(
        functools.partial(_phase2_kernel, inv_b=inv_b),
        out_shape=(hid_shape, stats_shape),
        grid_spec=pltpu.PrefetchScalarGridSpec(
            num_scalar_prefetch=0, grid=(nb,),
            in_specs=[row_spec(hidden), _whole((2, hidden)),
                      _whole((hidden, hidden)), _whole((SUBLANE, W))],
            out_specs=[row_spec(hidden), stats_out_spec]),
        compiler_params=cparams,
    )(h1, stats1, params["w2"], params["vecs"])
    stats2 = jnp.sum(p2, axis=0)

    # Phase 3: BN2 affine -> linear3 -> out.
    out = pl.pallas_call(
        functools.partial(_phase3_kernel, inv_b=inv_b),
        out_shape=jax.ShapeDtypeStruct((B, d_pad), jnp.float32),
        grid_spec=pltpu.PrefetchScalarGridSpec(
            num_scalar_prefetch=0, grid=(nb,),
            in_specs=[row_spec(hidden), _whole((2, hidden)),
                      _whole((hidden, d_pad)), _whole((SUBLANE, W))],
            out_specs=row_spec(d_pad)),
        compiler_params=cparams,
    )(h2, stats2, params["w3"], params["vecs"])
    return out


def _auto_batch_tile(B):
    if B <= MONOLITHIC_MAX_ROWS:
        return None
    for tb in (512, 256, 128, 64, 32, 16, 8):
        if B % tb == 0:
            return tb
    # TODO(synk): ragged batches would need row-masked BN statistics; fall back
    # to the monolithic kernel (correct, just VMEM-hungry) until then.
    return None


def dni_linear_forward(x, params, input_dims, batch_tile=None):
    """x: (B, input_dims) f32.  params: dict from init_params (lane-padded)."""
    B, D = x.shape
    assert D == input_dims
    d_pad = params["w1"].shape[0]
    if d_pad != D:
        x = jnp.pad(x, ((0, 0), (0, d_pad - D)))      # lane-dense feature dim
    x = x.astype(jnp.bfloat16)                        # halve streaming-input DMA

    vmem_limit = _vmem_limit_bytes()
    if batch_tile is None:
        batch_tile = _auto_batch_tile(B)
    if batch_tile is not None and (batch_tile % SUBLANE or B % batch_tile):
        batch_tile = None                             # unusable tile -> monolithic

    if batch_tile is None:
        out = _monolithic_call(x, params, vmem_limit)
    else:
        out = _tiled_call(x, params, batch_tile, vmem_limit)
    return out[:, :input_dims]                        # drop lane padding


def init_params(key, input_dims, hidden):
    """Mirrors nn.Linear init (U(+-1/sqrt(fan_in))) and nn.BatchNorm1d
    (gamma=1, beta=0).  Weights stored (in, out) in bf16 and lane-padded on the
    input_dims axis; all bias/gamma/beta vectors are packed into one (8, W) f32
    slab (rows: b1, g1, be1, b2, g2, be2, b3, pad)."""
    assert hidden % LANE == 0, "dni_hidden_size must be a multiple of 128"
    d_pad = _round_up(input_dims)
    W = max(hidden, d_pad)
    ks = jax.random.split(key, 6)

    def lin(kw, kb, fan_in, fan_out):
        bound = 1.0 / math.sqrt(fan_in)
        w = jax.random.uniform(kw, (fan_in, fan_out), jnp.float32, -bound, bound)
        b = jax.random.uniform(kb, (fan_out,), jnp.float32, -bound, bound)
        return w, b

    w1, b1 = lin(ks[0], ks[1], input_dims, hidden)
    w2, b2 = lin(ks[2], ks[3], hidden, hidden)
    w3, b3 = lin(ks[4], ks[5], hidden, input_dims)

    # Zero-pad the lane-sparse feature dim to 128; padded rows/cols contribute 0.
    w1 = jnp.pad(w1, ((0, d_pad - input_dims), (0, 0)))
    w3 = jnp.pad(w3, ((0, 0), (0, d_pad - input_dims)))
    b3 = jnp.pad(b3, (0, d_pad - input_dims))

    def row(v):
        return jnp.pad(v.astype(jnp.float32), (0, W - v.shape[0]))[None, :]

    ones = jnp.ones((hidden,), jnp.float32)
    zeros = jnp.zeros((hidden,), jnp.float32)
    vecs = jnp.concatenate(
        [row(b1), row(ones), row(zeros),
         row(b2), row(ones), row(zeros),
         row(b3), jnp.zeros((1, W), jnp.float32)], axis=0)

    return dict(w1=w1.astype(jnp.bfloat16),
                w2=w2.astype(jnp.bfloat16),
                w3=w3.astype(jnp.bfloat16),
                vecs=vecs)


def _reference(x, p, input_dims, store_hidden_bf16=False):
    """Plain-JAX reference mirroring the kernels' dtype policy (bf16 MXU
    inputs, f32 accumulation / BN math).  store_hidden_bf16=True mirrors the
    batch-tiled path, whose pre-BN activations round-trip through bf16 HBM."""
    d_pad, hidden = p["w1"].shape
    v = p["vecs"]
    b1, g1, be1 = v[0:1, :hidden], v[1:2, :hidden], v[2:3, :hidden]
    b2, g2, be2 = v[3:4, :hidden], v[4:5, :hidden], v[5:6, :hidden]
    b3 = v[6:7, :d_pad]
    x = jnp.pad(x, ((0, 0), (0, d_pad - x.shape[1]))).astype(jnp.bfloat16)

    def dot(a, w):
        return jnp.dot(a, w, preferred_element_type=jnp.float32)

    def layer(h_in, w, b, g, be):
        h = jnp.maximum(dot(h_in, w) + b, 0.0)
        if store_hidden_bf16:
            h = h.astype(jnp.bfloat16).astype(jnp.float32)
        mu = jnp.mean(h, axis=0, keepdims=True)
        var = jnp.mean((h - mu) ** 2, axis=0, keepdims=True)
        scale = g * jax.lax.rsqrt(var + BN_EPS)
        shift = be - mu * scale
        return (h * scale + shift).astype(jnp.bfloat16)

    h = layer(x, p["w1"], b1, g1, be1)
    h = layer(h, p["w2"], b2, g2, be2)
    out = dot(h, p["w3"]) + b3
    return out[:, :input_dims]


if __name__ == "__main__":
    INPUT_DIMS, HIDDEN = 32, 128      # small shapes; module default hidden=1024

    key = jax.random.PRNGKey(0)
    kx1, kx2, kp = jax.random.split(key, 3)
    params = init_params(kp, INPUT_DIMS, HIDDEN)

    # Small batch -> monolithic fused kernel.
    x_small = jax.random.normal(kx1, (8, INPUT_DIMS), jnp.float32)
    out_small = jax.block_until_ready(
        dni_linear_forward(x_small, params, INPUT_DIMS))
    ref_small = _reference(x_small, params, INPUT_DIMS)
    assert out_small.shape == (8, INPUT_DIMS)
    assert jnp.allclose(out_small, ref_small, atol=2e-3, rtol=2e-3), \
        "monolithic kernel mismatch vs JAX reference"

    # Larger batch -> batch-tiled 3-phase pipeline (forced via batch_tile).
    x_big = jax.random.normal(kx2, (256, INPUT_DIMS), jnp.float32)
    out_big = jax.block_until_ready(
        dni_linear_forward(x_big, params, INPUT_DIMS, batch_tile=128))
    ref_big = _reference(x_big, params, INPUT_DIMS, store_hidden_bf16=True)
    assert out_big.shape == (256, INPUT_DIMS)
    assert jnp.allclose(out_big, ref_big, atol=3e-3, rtol=3e-3), \
        "batch-tiled kernel mismatch vs JAX reference"

    print("KERNEL_OK")
</pallas_src>

<mosaic_0001>
module attributes {stable_mosaic.version = 11 : i64} {
  func.func @_dni_monolithic_kernel(%arg0: memref<8x128xbf16, #tpu.memory_space<vmem>>, %arg1: memref<128x128xbf16, #tpu.memory_space<vmem>>, %arg2: memref<128x128xbf16, #tpu.memory_space<vmem>>, %arg3: memref<128x128xbf16, #tpu.memory_space<vmem>>, %arg4: memref<8x128xf32, #tpu.memory_space<vmem>>, %arg5: memref<8x128xf32, #tpu.memory_space<vmem>>) attributes {dimension_semantics = [], scalar_prefetch = 0 : i64, scratch_operands = 0 : i64, tpu.core_type = #tpu.core_type<tc>} {
    %c0 = arith.constant 0 : index
    %c0_0 = arith.constant 0 : index
    %0 = vector.load %arg0[%c0, %c0_0] : memref<8x128xbf16, #tpu.memory_space<vmem>>, vector<8x128xbf16>
    %c0_1 = arith.constant 0 : index
    %c0_2 = arith.constant 0 : index
    %1 = vector.load %arg4[%c0_1, %c0_2] : memref<8x128xf32, #tpu.memory_space<vmem>>, vector<1x128xf32>
    %c1 = arith.constant 1 : index
    %c0_3 = arith.constant 0 : index
    %2 = vector.load %arg4[%c1, %c0_3] : memref<8x128xf32, #tpu.memory_space<vmem>>, vector<1x128xf32>
    %c2 = arith.constant 2 : index
    %c0_4 = arith.constant 0 : index
    %3 = vector.load %arg4[%c2, %c0_4] : memref<8x128xf32, #tpu.memory_space<vmem>>, vector<1x128xf32>
    %c0_5 = arith.constant 0 : index
    %c0_6 = arith.constant 0 : index
    %4 = vector.load %arg1[%c0_5, %c0_6] : memref<128x128xbf16, #tpu.memory_space<vmem>>, vector<128x128xbf16>
    %cst = arith.constant dense<0.000000e+00> : vector<8x128xf32>
    %5 = tpu.matmul %0, %4, %cst {dimension_numbers = #tpu.dot_dimension_numbers<[1], [0], [0], [1], [0, 0, 1, 1], [], []>} : vector<8x128xbf16>, vector<128x128xbf16>, vector<8x128xf32> -> vector<8x128xf32>
    %6 = vector.broadcast %1 : vector<1x128xf32> to vector<8x128xf32>
    %7 = arith.addf %5, %6 : vector<8x128xf32>
    %cst_7 = arith.constant 0.000000e+00 : f32
    %8 = vector.broadcast %cst_7 : f32 to vector<8x128xf32>
    %9 = arith.maximumf %7, %8 : vector<8x128xf32>
    %cst_8 = arith.constant dense<0.000000e+00> : vector<128xf32>
    %10 = vector.multi_reduction <add>, %9, %cst_8 [0] : vector<8x128xf32> to vector<128xf32>
    %11 = vector.shape_cast %10 : vector<128xf32> to vector<1x128xf32>
    %12 = arith.mulf %9, %9 : vector<8x128xf32>
    %cst_9 = arith.constant dense<0.000000e+00> : vector<128xf32>
    %13 = vector.multi_reduction <add>, %12, %cst_9 [0] : vector<8x128xf32> to vector<128xf32>
    %14 = vector.shape_cast %13 : vector<128xf32> to vector<1x128xf32>
    %cst_10 = arith.constant 1.250000e-01 : f32
    %15 = vector.broadcast %cst_10 : f32 to vector<1x128xf32>
    %16 = arith.mulf %11, %15 : vector<1x128xf32>
    %cst_11 = arith.constant 1.250000e-01 : f32
    %17 = vector.broadcast %cst_11 : f32 to vector<1x128xf32>
    %18 = arith.mulf %14, %17 : vector<1x128xf32>
    %19 = arith.mulf %16, %16 : vector<1x128xf32>
    %20 = arith.subf %18, %19 : vector<1x128xf32>
    %cst_12 = arith.constant 0.000000e+00 : f32
    %21 = vector.broadcast %cst_12 : f32 to vector<1x128xf32>
    %22 = arith.maximumf %20, %21 : vector<1x128xf32>
    %cst_13 = arith.constant 9.99999974E-6 : f32
    %23 = vector.broadcast %cst_13 : f32 to vector<1x128xf32>
    %24 = arith.addf %22, %23 : vector<1x128xf32>
    %25 = math.rsqrt %24 : vector<1x128xf32>
    %26 = arith.mulf %2, %25 : vector<1x128xf32>
    %27 = arith.mulf %16, %26 : vector<1x128xf32>
    %28 = arith.subf %3, %27 : vector<1x128xf32>
    %29 = vector.broadcast %26 : vector<1x128xf32> to vector<8x128xf32>
    %30 = arith.mulf %9, %29 : vector<8x128xf32>
    %31 = vector.broadcast %28 : vector<1x128xf32> to vector<8x128xf32>
    %32 = arith.addf %30, %31 : vector<8x128xf32>
    %33 = arith.truncf %32 : vector<8x128xf32> to vector<8x128xbf16>
    %c3 = arith.constant 3 : index
    %c0_14 = arith.constant 0 : index
    %34 = vector.load %arg4[%c3, %c0_14] : memref<8x128xf32, #tpu.memory_space<vmem>>, vector<1x128xf32>
    %c4 = arith.constant 4 : index
    %c0_15 = arith.constant 0 : index
    %35 = vector.load %arg4[%c4, %c0_15] : memref<8x128xf32, #tpu.memory_space<vmem>>, vector<1x128xf32>
    %c5 = arith.constant 5 : index
    %c0_16 = arith.constant 0 : index
    %36 = vector.load %arg4[%c5, %c0_16] : memref<8x128xf32, #tpu.memory_space<vmem>>, vector<1x128xf32>
    %c0_17 = arith.constant 0 : index
    %c0_18 = arith.constant 0 : index
    %37 = vector.load %arg2[%c0_17, %c0_18] : memref<128x128xbf16, #tpu.memory_space<vmem>>, vector<128x128xbf16>
    %cst_19 = arith.constant dense<0.000000e+00> : vector<8x128xf32>
    %38 = tpu.matmul %33, %37, %cst_19 {dimension_numbers = #tpu.dot_dimension_numbers<[1], [0], [0], [1], [0, 0, 1, 1], [], []>} : vector<8x128xbf16>, vector<128x128xbf16>, vector<8x128xf32> -> vector<8x128xf32>
    %39 = vector.broadcast %34 : vector<1x128xf32> to vector<8x128xf32>
    %40 = arith.addf %38, %39 : vector<8x128xf32>
    %cst_20 = arith.constant 0.000000e+00 : f32
    %41 = vector.broadcast %cst_20 : f32 to vector<8x128xf32>
    %42 = arith.maximumf %40, %41 : vector<8x128xf32>
    %cst_21 = arith.constant dense<0.000000e+00> : vector<128xf32>
    %43 = vector.multi_reduction <add>, %42, %cst_21 [0] : vector<8x128xf32> to vector<128xf32>
    %44 = vector.shape_cast %43 : vector<128xf32> to vector<1x128xf32>
    %45 = arith.mulf %42, %42 : vector<8x128xf32>
    %cst_22 = arith.constant dense<0.000000e+00> : vector<128xf32>
    %46 = vector.multi_reduction <add>, %45, %cst_22 [0] : vector<8x128xf32> to vector<128xf32>
    %47 = vector.shape_cast %46 : vector<128xf32> to vector<1x128xf32>
    %cst_23 = arith.constant 1.250000e-01 : f32
    %48 = vector.broadcast %cst_23 : f32 to vector<1x128xf32>
    %49 = arith.mulf %44, %48 : vector<1x128xf32>
    %cst_24 = arith.constant 1.250000e-01 : f32
    %50 = vector.broadcast %cst_24 : f32 to vector<1x128xf32>
    %51 = arith.mulf %47, %50 : vector<1x128xf32>
    %52 = arith.mulf %49, %49 : vector<1x128xf32>
    %53 = arith.subf %51, %52 : vector<1x128xf32>
    %cst_25 = arith.constant 0.000000e+00 : f32
    %54 = vector.broadcast %cst_25 : f32 to vector<1x128xf32>
    %55 = arith.maximumf %53, %54 : vector<1x128xf32>
    %cst_26 = arith.constant 9.99999974E-6 : f32
    %56 = vector.broadcast %cst_26 : f32 to vector<1x128xf32>
    %57 = arith.addf %55, %56 : vector<1x128xf32>
    %58 = math.rsqrt %57 : vector<1x128xf32>
    %59 = arith.mulf %35, %58 : vector<1x128xf32>
    %60 = arith.mulf %49, %59 : vector<1x128xf32>
    %61 = arith.subf %36, %60 : vector<1x128xf32>
    %62 = vector.broadcast %59 : vector<1x128xf32> to vector<8x128xf32>
    %63 = arith.mulf %42, %62 : vector<8x128xf32>
    %64 = vector.broadcast %61 : vector<1x128xf32> to vector<8x128xf32>
    %65 = arith.addf %63, %64 : vector<8x128xf32>
    %66 = arith.truncf %65 : vector<8x128xf32> to vector<8x128xbf16>
    %c0_27 = arith.constant 0 : index
    %c0_28 = arith.constant 0 : index
    %67 = vector.load %arg3[%c0_27, %c0_28] : memref<128x128xbf16, #tpu.memory_space<vmem>>, vector<128x128xbf16>
    %cst_29 = arith.constant dense<0.000000e+00> : vector<8x128xf32>
    %68 = tpu.matmul %66, %67, %cst_29 {dimension_numbers = #tpu.dot_dimension_numbers<[1], [0], [0], [1], [0, 0, 1, 1], [], []>} : vector<8x128xbf16>, vector<128x128xbf16>, vector<8x128xf32> -> vector<8x128xf32>
    %c6 = arith.constant 6 : index
    %c0_30 = arith.constant 0 : index
    %69 = vector.load %arg4[%c6, %c0_30] : memref<8x128xf32, #tpu.memory_space<vmem>>, vector<1x128xf32>
    %70 = vector.broadcast %69 : vector<1x128xf32> to vector<8x128xf32>
    %71 = arith.addf %68, %70 : vector<8x128xf32>
    %c0_31 = arith.constant 0 : index
    %c0_32 = arith.constant 0 : index
    %72 = vector.load %arg5[%c0_31, %c0_32] : memref<8x128xf32, #tpu.memory_space<vmem>>, vector<8x128xf32>
    tpu.vector_store %arg5[%c0_31, %c0_32], %71 {strides = array<i32>} : memref<8x128xf32, #tpu.memory_space<vmem>>, vector<8x128xf32>,
    return
  }
}

</mosaic_0001>

<bundles_post_ra>
// kernel: tpu_custom_call.1
= control target key start
LH: loop header
LB: loop body
LE: loop exit
PB: predicated region body
PF: predicated region fallthrough
CT: control target
= control target key end

     0   :  { %10 = vsyncpa [#allocation3], 0  ;;  %s929_s0 = inlined_call_operand.hbm [shape: bf16[8,128], index: 0, kind: input, shape index: {}]   ;;  %s930_s1 = inlined_call_operand.hbm [shape: bf16[128,128], index: 1, kind: input, shape index: {}]   ;;  %s931_s2 = inlined_call_operand.hbm [shape: bf16[128,128], index: 2, kind: input, shape index: {}]   ;;  %s932_s3 = inlined_call_operand.hbm [shape: bf16[128,128], index: 3, kind: input, shape index: {}]   ;;  %s933_s4 = inlined_call_operand.vmem [shape: f32[8,128], index: 4, kind: input, shape index: {}]   ;;  %s934_s5 = inlined_call_operand.hbm [shape: f32[8,128], index: 5, kind: output, shape index: {}]  }
   0x1   :  { %11 = vsyncpa [#allocation6], 0 }
   0x2   :  { %12 = vsyncpa [#allocation9], 0 }
   0x3   :  { %13 = vsyncpa [#allocation4], 0  ;;  %s764_s18 = smov [#allocation5]   ;;  %s646_s22 = scalar_lea.hbm %s930_s1, 1024 }
   0x4   :  { %s29_s19 = sshll.u32 %s764_s18, 4  ;;  %p647_p0 = scmp.ne.s32.totalorder %s930_s1, %s646_s22  ;;  %s30_s19 = int_to_ptr.vmem [resolvable:$true] %s29_s19 }
   0x5   :  { %p650_p1 = scmp.lt.u32.totalorder %s646_s22, %s930_s1 }
   0x7   :  { %p652_p2 = pnand %p650_p1, %p647_p0 }
   0x9   :  { %655 = shalt.err (!%p652_p2)
}
   0xa   :  { %s656_s27 = scalar_lea.vmem %s30_s19, 1024  ;;  %p661_p4 = scmp.lt.s32.totalorder %s30_s19, %s30_s19 }
   0xb   :  { %p657_p3 = scmp.ne.s32.totalorder %s30_s19, %s656_s27  ;;  %p662_p5 = scmp.lt.s32.totalorder %s656_s27, %s656_s27 }
   0xd   :  { %p663_p6 = por %p662_p5, %p661_p4 }
   0xf   :  { %p664_p7 = pnand %p663_p6, %p657_p3 }
  0x11   :  { %667 = shalt.err (!%p664_p7)
}
  0x12   :  { %s765_s28 = smov 64   ;;  %s766_s29 = smov 4  }
  0x13   :  { %35 = dma.hbm_to_vmem [thread:$0]  %s930_s1, 1024, %s30_s19, [#allocation6], %s765_s28, %s765_s28, %s766_s29  }
  0x14   :  { %s767_s7 = smov [#allocation2]   ;;  %s768_s9 = smov [#allocation7]  }
  0x15   :  { %s20_s8 = sshll.u32 %s767_s7, 4  ;;  %s41_s10 = sshll.u32 %s768_s9, 4  ;;  %s21_s8 = int_to_ptr.vmem [resolvable:$true] %s20_s8  ;;  %s42_s10 = int_to_ptr.vmem [resolvable:$true] %s41_s10 }
  0x16   :  { %s668_s13 = scalar_lea.hbm %s929_s0, 64 }
  0x17   :  { %p669_p8 = scmp.ne.s32.totalorder %s929_s0, %s668_s13  ;;  %p672_p9 = scmp.lt.u32.totalorder %s668_s13, %s929_s0 }
  0x19   :  { %p674_p10 = pnand %p672_p9, %p669_p8 }
  0x1b   :  { %677 = shalt.err (!%p674_p10)
}
  0x1c   :  { %s678_s1 = scalar_lea.vmem %s21_s8, 64  ;;  %p683_p12 = scmp.lt.s32.totalorder %s21_s8, %s21_s8 }
  0x1d   :  { %p679_p11 = scmp.ne.s32.totalorder %s21_s8, %s678_s1  ;;  %p684_p13 = scmp.lt.s32.totalorder %s678_s1, %s678_s1 }
  0x1f   :  { %p685_p0 = por %p684_p13, %p683_p12 }
  0x21   :  { %p686_p1 = pnand %p685_p0, %p679_p11 }
  0x23   :  { %689 = shalt.err (!%p686_p1)
}
  0x24   :  { %23 = dma.hbm_to_vmem [thread:$0]  %s929_s0, 64, %s21_s8, [#allocation3]  }
  0x25   :  { %s690_s22 = scalar_lea.hbm %s931_s2, 1024 }
  0x26   :  { %p691_p2 = scmp.ne.s32.totalorder %s931_s2, %s690_s22  ;;  %p694_p3 = scmp.lt.u32.totalorder %s690_s22, %s931_s2 }
  0x28   :  { %p696_p4 = pnand %p694_p3, %p691_p2 }
  0x2a   :  { %699 = shalt.err (!%p696_p4)
}
  0x2b   :  { %s700_s27 = scalar_lea.vmem %s42_s10, 1024  ;;  %p705_p6 = scmp.lt.s32.totalorder %s42_s10, %s42_s10 }
  0x2c   :  { %p701_p5 = scmp.ne.s32.totalorder %s42_s10, %s700_s27  ;;  %p706_p7 = scmp.lt.s32.totalorder %s700_s27, %s700_s27 }
  0x2e   :  { %p707_p8 = por %p706_p7, %p705_p6 }
  0x30   :  { %p708_p9 = pnand %p707_p8, %p701_p5 }
  0x32   :  { %711 = shalt.err (!%p708_p9)
}
  0x33   :  { %47 = dma.hbm_to_vmem [thread:$0]  %s931_s2, 1024, %s42_s10, [#allocation6], %s765_s28, %s765_s28, %s766_s29  }
  0x34   :  { %s769_s6 = smov [#allocation8]   ;;  %s712_s11 = scalar_lea.hbm %s932_s3, 1024 }
  0x35   :  { %s53_s7 = sshll.u32 %s769_s6, 4  ;;  %p713_p10 = scmp.ne.s32.totalorder %s932_s3, %s712_s11  ;;  %s54_s7 = int_to_ptr.vmem [resolvable:$true] %s53_s7 }
  0x36   :  { %p716_p11 = scmp.lt.u32.totalorder %s712_s11, %s932_s3 }
  0x38   :  { %p718_p12 = pnand %p716_p11, %p713_p10 }
  0x3a   :  { %721 = shalt.err (!%p718_p12)
}
  0x3b   :  { %s722_s16 = scalar_lea.vmem %s54_s7, 1024  ;;  %p727_p0 = scmp.lt.s32.totalorder %s54_s7, %s54_s7 }
  0x3c   :  { %p723_p13 = scmp.ne.s32.totalorder %s54_s7, %s722_s16  ;;  %p728_p1 = scmp.lt.s32.totalorder %s722_s16, %s722_s16 }
  0x3e   :  { %p729_p2 = por %p728_p1, %p727_p0 }
  0x40   :  { %p730_p3 = pnand %p729_p2, %p723_p13 }
  0x42   :  { %733 = shalt.err (!%p730_p3)
}
  0x43   :  { %59 = dma.hbm_to_vmem [thread:$0]  %s932_s3, 1024, %s54_s7, [#allocation9], %s765_s28, %s765_s28, %s766_s29  }
  0x44   :  { %756 = dma.done.wait [#allocation3], 64  }
  0x45   :  { %757 = vsyncadd [#allocation3], 4294967232 }
  0x46   :  { %758 = dma.done.wait [#allocation6], 2048  }
  0x47   :  { %759 = vsyncadd [#allocation6], 4294965248 }
  0x48   :  { %760 = dma.done.wait [#allocation9], 1024  }
  0x49   :  { %761 = vsyncadd [#allocation9], 4294966272  ;;  %v770_v0 = vmov 0.0   ;;  %vm771_vm0 = vmmov 0   ;;  %v618_v1 = vld [vmem:[#allocation5] sm:$0xff]   ;;  %v619_v2 = vld [vmem:[#allocation5 + $0x8] sm:$0xff]   ;;  %v211_v44 = vlaneseq }
  0x4a   :  { %549 = vmatprep.subr.bf16.mxu0 %v770_v0  ;;  %565 = vmatprep.mubr.msk.bf16.mxu0 %vm771_vm0, %v770_v0  ;;  %v620_v3 = vld [vmem:[#allocation5 + $0x10] sm:$0xff]   ;;  %v621_v4 = vld [vmem:[#allocation5 + $0x18] sm:$0xff]   ;;  %v622_v5 = vld [vmem:[#allocation5 + $0x20] sm:$0xff]   ;;  %s772_s27 = smov [#allocation10]  }
  0x4b   :  { %569 = vmatprep.subr.bf16.mxu1 %v770_v0  ;;  %585 = vmatprep.mubr.msk.bf16.mxu1 %vm771_vm0, %v770_v0  ;;  %v623_v6 = vld [vmem:[#allocation5 + $0x28] sm:$0xff]   ;;  %v624_v7 = vld [vmem:[#allocation5 + $0x30] sm:$0xff]   ;;  %v625_v8 = vld [vmem:[#allocation5 + $0x38] sm:$0xff]   ;;  %v212_v45 = vshrl.u32 %v211_v44, 7  ;;  %s484_s0 = sshll.u32 %s772_s27, 4  ;;  %s485_s0 = int_to_ptr.vmem [resolvable:$true] %s484_s0 }
  0x4c   :  { %550 = vmatpush3.bf16.msra.mxu0 %v618_v1  ;;  %v75_v9 = vld [vmem:[#allocation2] sm:$0xf]  ;;  %v626_v10 = vld [vmem:[#allocation7] sm:$0xff]   ;;  %v627_v11 = vld [vmem:[#allocation7 + $0x8] sm:$0xff]   ;;  %s734_s30 = scalar_lea.vmem %s485_s0, 128  ;;  %p739_p5 = scmp.lt.s32.totalorder %s485_s0, %s485_s0 }
  0x4d   :  { %551 = vmatprep.subr.bf16.mxu0 %v770_v0  ;;  %570 = vmatpush3.bf16.msra.mxu1 %v626_v10  ;;  %v628_v12 = vld [vmem:[#allocation7 + $0x10] sm:$0xff]   ;;  %v629_v13 = vld [vmem:[#allocation7 + $0x18] sm:$0xff]   ;;  %v630_v14 = vld [vmem:[#allocation7 + $0x20] sm:$0xff]   ;;  %v889_v47 = vsub.s32 0, %v212_v45  ;;  %p735_p4 = scmp.ne.s32.totalorder %s485_s0, %s734_s30  ;;  %p740_p6 = scmp.lt.s32.totalorder %s734_s30, %s734_s30 }
  0x4e   :  { %571 = vmatprep.subr.bf16.mxu1 %v770_v0  ;;  %v631_v15 = vld [vmem:[#allocation7 + $0x28] sm:$0xff]   ;;  %v632_v16 = vld [vmem:[#allocation7 + $0x30] sm:$0xff]   ;;  %v633_v17 = vld [vmem:[#allocation7 + $0x38] sm:$0xff]  }
  0x4f   :  { %v495_v18 = vld [vmem:[%s933_s4] ss:$0 sm:$0xff]  ;;  %v77_v46 = vld [vmem:[%s933_s4 + $0x1] sm:$0x1]  ;;  %v78_v50 = vld [vmem:[%s933_s4 + $0x2] sm:$0x1]  ;;  %p741_p7 = por %p740_p6, %p739_p5 }
  0x50   :  { %552 = vmatpush3.bf16.msra.mxu0 %v619_v2  ;;  %v634_v58 = vld [vmem:[#allocation8] sm:$0xff]   ;;  %v635_v59 = vld [vmem:[#allocation8 + $0x8] sm:$0xff]   ;;  %v636_v60 = vld [vmem:[#allocation8 + $0x10] sm:$0xff]  }
  0x51   :  { %553 = vmatprep.subr.bf16.mxu0 %v770_v0  ;;  %572 = vmatpush3.bf16.msra.mxu1 %v627_v11  ;;  %v637_v61 = vld [vmem:[#allocation8 + $0x18] sm:$0xff]   ;;  %v638_v62 = vld [vmem:[#allocation8 + $0x20] sm:$0xff]   ;;  %v639_v63 = vld [vmem:[#allocation8 + $0x28] sm:$0xff]   ;;  %p742_p8 = pnand %p741_p7, %p735_p4 }
  0x52   :  { %573 = vmatprep.subr.bf16.mxu1 %v770_v0  ;;  %v640_v1 = vld [vmem:[#allocation8 + $0x30] sm:$0xff]   ;;  %v641_v2 = vld [vmem:[#allocation8 + $0x38] sm:$0xff]  }
  0x54   :  { %554 = vmatpush3.bf16.msra.mxu0 %v620_v3  ;;  %v504_v3 = vld [vmem:[%s933_s4 + $0x3] ss:$0 sm:$0xff] }
  0x55   :  { %555 = vmatprep.subr.bf16.mxu0 %v770_v0  ;;  %574 = vmatpush3.bf16.msra.mxu1 %v628_v12 }
  0x56   :  { %575 = vmatprep.subr.bf16.mxu1 %v770_v0 }
  0x58   :  { %556 = vmatpush3.bf16.msra.mxu0 %v621_v4 }
  0x59   :  { %557 = vmatprep.subr.bf16.mxu0 %v770_v0  ;;  %576 = vmatpush3.bf16.msra.mxu1 %v629_v13 }
  0x5a   :  { %577 = vmatprep.subr.bf16.mxu1 %v770_v0 }
  0x5c   :  { %558 = vmatpush3.bf16.msra.mxu0 %v622_v5 }
  0x5d   :  { %559 = vmatprep.subr.bf16.mxu0 %v770_v0  ;;  %578 = vmatpush3.bf16.msra.mxu1 %v630_v14 }
  0x5e   :  { %579 = vmatprep.subr.bf16.mxu1 %v770_v0 }
  0x60   :  { %560 = vmatpush3.bf16.msra.mxu0 %v623_v6 }
  0x61   :  { %561 = vmatprep.subr.bf16.mxu0 %v770_v0  ;;  %580 = vmatpush3.bf16.msra.mxu1 %v631_v15 }
  0x62   :  { %581 = vmatprep.subr.bf16.mxu1 %v770_v0 }
  0x64   :  { %562 = vmatpush3.bf16.msra.mxu0 %v624_v7 }
  0x65   :  { %563 = vmatprep.subr.bf16.mxu0 %v770_v0  ;;  %582 = vmatpush3.bf16.msra.mxu1 %v632_v16 }
  0x66   :  { %583 = vmatprep.subr.bf16.mxu1 %v770_v0 }
  0x68   :  { %564 = vmatpush3.bf16.msra.mxu0 %v625_v8 }
  0x69   :  { %589 = vmatprep.subr.bf16.mxu0 %v770_v0  ;;  %584 = vmatpush3.bf16.msra.mxu1 %v633_v17 }
  0x6b   :  { %566 = vmatmul.mubr.bf16.vlgmr.msra.gmra.mrb[0].mxu0 %v75_v9 }
  0x6c   :  { %605 = vmatprep.mubr.msk.bf16.mxu0 %vm771_vm0, %v770_v0  ;;  %590 = vmatpush3.bf16.msra.mxu0 %v634_v58 }
  0x6d   :  { %591 = vmatprep.subr.bf16.mxu0 %v770_v0 }
  0x70   :  { %592 = vmatpush3.bf16.msra.mxu0 %v635_v59 }
  0x71   :  { %593 = vmatprep.subr.bf16.mxu0 %v770_v0 }
  0x74   :  { %594 = vmatpush3.bf16.msra.mxu0 %v636_v60 }
  0x75   :  { %595 = vmatprep.subr.bf16.mxu0 %v770_v0 }
  0x78   :  { %596 = vmatpush3.bf16.msra.mxu0 %v637_v61 }
  0x79   :  { %597 = vmatprep.subr.bf16.mxu0 %v770_v0 }
  0x7c   :  { %598 = vmatpush3.bf16.msra.mxu0 %v638_v62 }
  0x7d   :  { %599 = vmatprep.subr.bf16.mxu0 %v770_v0 }
  0x80   :  { %600 = vmatpush3.bf16.msra.mxu0 %v639_v63 }
  0x81   :  { %601 = vmatprep.subr.bf16.mxu0 %v770_v0 }
  0x84   :  { %602 = vmatpush3.bf16.msra.mxu0 %v640_v1 }
  0x85   :  { %603 = vmatprep.subr.bf16.mxu0 %v770_v0 }
  0x88   :  { %604 = vmatpush3.bf16.msra.mxu0 %v641_v2 }
 0x13e   :  { %v181_v19 = vpop.f32.mrb[0].mxu0 }
 0x13f   :  { %v182_v20 = vadd.f32 %v495_v18, %v181_v19  ;;  %v567_v21 = vpop.f32.mrb[1].mxu0 }
 0x140   :  { %v184_v22 = vpop.f32.mrb[2].mxu0 }
 0x141   :  { %v187_v23 = vmax.f32 %v182_v20, 0.0  ;;  %v568_v24 = vpop.f32.mrb[3].mxu0 }
 0x143   :  { %v188_v25 = vrot.slane %v187_v23, 4  ;;  %v194_v26 = vmul.f32 %v187_v23, %v187_v23 }
 0x145   :  { %v189_v27 = vadd.f32 %v188_v25, %v187_v23  ;;  %v195_v28 = vrot.slane %v194_v26, 4 }
 0x147   :  { %v190_v29 = vrot.slane %v189_v27, 2  ;;  %v196_v30 = vadd.f32 %v195_v28, %v194_v26  ;;  %v223_v28 = vld [vmem:[%s933_s4 + $0x4] sm:$0x1] }
 0x149   :  { %v191_v31 = vadd.f32 %v190_v29, %v189_v27  ;;  %v197_v32 = vrot.slane %v196_v30, 2 }
 0x14b   :  { %v192_v33 = vrot.slane %v191_v31, 1  ;;  %v198_v34 = vadd.f32 %v197_v32, %v196_v30 }
 0x14d   :  { %v199_v35 = vrot.slane %v198_v34, 1  ;;  %v193_v36 = vadd.f32 %v192_v33, %v191_v31  ;;  %v224_v31 = vld [vmem:[%s933_s4 + $0x5] sm:$0x1] }
 0x14f   :  { %v200_v37 = vadd.f32 %v199_v35, %v198_v34  ;;  %v201_v38 = vmul.f32 0.125, %v193_v36 }
 0x151   :  { %v202_v39 = vmul.f32 0.125, %v200_v37  ;;  %v203_v40 = vmul.f32 %v201_v38, %v201_v38 }
 0x153   :  { %v204_v41 = vsub.f32 %v202_v39, %v203_v40  ;;  %v513_v39 = vld [vmem:[%s933_s4 + $0x6] ss:$0 sm:$0xff] }
 0x155   :  { %v205_v42 = vmax.f32 %v204_v41, 0.0 }
 0x157   :  { %v206_v43 = vadd.f32 1e-05, %v205_v42 }
 0x159   :  { %642 = vrsqrt.f32 %v206_v43 }
 0x163   :  { %v643_v48 = vpop.eup %642 }
 0x164   :  { %v208_v49 = vmul.f32 %v643_v48, %v77_v46 }
 0x166   :  { %v209_v51 = vmul.f32 %v208_v49, %v201_v38  ;;  %v214_v52 = vrot.slane %v208_v49, %v889_v47 }
 0x168   :  { %v210_v53 = vsub.f32 %v78_v50, %v209_v51  ;;  %v215_v54 = vmul.f32 %v214_v52, %v187_v23 }
 0x16a   :  { %v219_v55 = vrot.slane %v210_v53, %v889_v47 }
 0x16c   :  { %v220_v56 = vadd.f32 %v219_v55, %v215_v54 }
 0x16e   :  { %v221_v57 = vpack.c.bf16 %v220_v56, %v220_v56 }
 0x170   :  { %586 = vmatmul.mubr.bf16.vlgmr.msra.gmra.mrb[0].mxu1 %v221_v57 }
 0x243   :  { %v327_v4 = vpop.f32.mrb[0].mxu1 }
 0x244   :  { %v328_v5 = vadd.f32 %v504_v3, %v327_v4  ;;  %v587_v6 = vpop.f32.mrb[1].mxu1 }
 0x245   :  { %v330_v7 = vpop.f32.mrb[2].mxu1 }
 0x246   :  { %v333_v8 = vmax.f32 %v328_v5, 0.0  ;;  %v588_v9 = vpop.f32.mrb[3].mxu1 }
 0x248   :  { %v334_v10 = vrot.slane %v333_v8, 4  ;;  %v340_v11 = vmul.f32 %v333_v8, %v333_v8 }
 0x24a   :  { %v335_v12 = vadd.f32 %v334_v10, %v333_v8  ;;  %v341_v13 = vrot.slane %v340_v11, 4 }
 0x24c   :  { %v336_v14 = vrot.slane %v335_v12, 2  ;;  %v342_v15 = vadd.f32 %v341_v13, %v340_v11 }
 0x24e   :  { %v337_v16 = vadd.f32 %v336_v14, %v335_v12  ;;  %v343_v17 = vrot.slane %v342_v15, 2 }
 0x250   :  { %v338_v0 = vrot.slane %v337_v16, 1  ;;  %v344_v18 = vadd.f32 %v343_v17, %v342_v15 }
 0x252   :  { %v339_v19 = vadd.f32 %v338_v0, %v337_v16  ;;  %v345_v20 = vrot.slane %v344_v18, 1 }
 0x254   :  { %v346_v21 = vadd.f32 %v345_v20, %v344_v18  ;;  %v347_v22 = vmul.f32 0.125, %v339_v19 }
 0x256   :  { %v348_v23 = vmul.f32 0.125, %v346_v21  ;;  %v349_v24 = vmul.f32 %v347_v22, %v347_v22 }
 0x258   :  { %v350_v25 = vsub.f32 %v348_v23, %v349_v24 }
 0x25a   :  { %v351_v26 = vmax.f32 %v350_v25, 0.0 }
 0x25c   :  { %v352_v27 = vadd.f32 1e-05, %v351_v26 }
 0x25e   :  { %644 = vrsqrt.f32 %v352_v27 }
 0x268   :  { %v645_v29 = vpop.eup %644 }
 0x269   :  { %v354_v30 = vmul.f32 %v645_v29, %v223_v28 }
 0x26b   :  { %v360_v32 = vrot.slane %v354_v30, %v889_v47  ;;  %v355_v33 = vmul.f32 %v354_v30, %v347_v22 }
 0x26d   :  { %v356_v34 = vsub.f32 %v224_v31, %v355_v33  ;;  %v361_v35 = vmul.f32 %v360_v32, %v333_v8 }
 0x26f   :  { %v365_v36 = vrot.slane %v356_v34, %v889_v47 }
 0x271   :  { %v366_v37 = vadd.f32 %v365_v36, %v361_v35 }
 0x273   :  { %v367_v38 = vpack.c.bf16 %v366_v37, %v366_v37 }
 0x275   :  { %606 = vmatmul.mubr.bf16.vlgmr.msra.gmra.mrb[4].mxu0 %v367_v38 }
 0x348   :  { %v471_v40 = vpop.f32.mrb[4].mxu0 }
 0x349   :  { %v472_v41 = vadd.f32 %v513_v39, %v471_v40  ;;  %v607_v42 = vpop.f32.mrb[5].mxu0 }
 0x34a   :  { %v474_v43 = vpop.f32.mrb[6].mxu0 }
 0x34b   :  { %477 = vst [vmem:[#allocation10] sm:$0xff] %v472_v41  ;;  %v608_v44 = vpop.f32.mrb[7].mxu0 }
 0x34c   :  { %745 = shalt.err (!%p742_p8)
}
 0x34d   :  { %s746_s4 = scalar_lea.hbm %s934_s5, 128 }
 0x34e   :  { %p747_p9 = scmp.ne.s32.totalorder %s934_s5, %s746_s4  ;;  %p750_p10 = scmp.lt.u32.totalorder %s746_s4, %s934_s5 }
 0x350   :  { %p752_p11 = pnand %p750_p10, %p747_p9 }
 0x352   :  { %755 = shalt.err (!%p752_p11)
}
 0x353   :  { %487 = dma.vmem_to_hbm [thread:$0]  %s485_s0, 128, %s934_s5, [#allocation4]  }
 0x354   :  { %762 = dma.done.wait [#allocation4], 128  }
 0x355   :  { %763 = vsyncadd [#allocation4], 4294967168 }
 0x356   :  { %491 = vsyncpa [#allocation3], 1 }
 0x357   :  { %492 = vsyncpa [#allocation6], 1 }
 0x358   :  { %493 = vsyncpa [#allocation9], 1 }
 0x359   :  { %494 = vsyncpa [#allocation4], 1 }

</bundles_post_ra>
